<compile_context>
chip_gen: v7x
topology: tpu7x:2x2x1
jax: 0.10.0
libtpu: 0.0.40
codegen_flags: <defaults>
</compile_context>

<pallas_src>
import math

import numpy as np
import jax
import jax.numpy as jnp
from jax import lax
from jax.experimental import pallas as pl
from jax.experimental.pallas import tpu as pltpu

# ---- model constants (scaled-down, shape-consistent with the module) ----
NUM_SUBREDDITS = 128      # original: 20000 (scaled down for the demo)
SUB_REP_DIM    = 3
NODE_FEATURES  = 6
OUT_DIM        = 1
EMBED_HIDDEN   = 64
GCN_DIM        = 32
PRED_HIDDEN    = 32

LANE = 128                # TPU lane width; all HBM-resident intermediates are padded to it


def _round_up(a, m):
    return -(-a // m) * m


# --------------------------------------------------------------------------------------
# Kernels
# --------------------------------------------------------------------------------------
def embed_kernel(s_ref, waug_ref, dinv_ref, be1_ref, we2_ref, be2_ref, wg1_ref,
                 m1_ref, acc_ref):
    """M1 = dinv * (MLP_embed([x|S]) @ Wg1); K-reduction over the (subreddit+feature) axis."""
    k = pl.program_id(1)

    @pl.when(k == 0)
    def _():
        acc_ref[...] = jnp.zeros_like(acc_ref)

    # cat((x, S@R), 1) @ We1 == [S | x] @ [[R @ We1_sub]; [We1_x]]  (folded offline)
    acc_ref[...] += jnp.dot(s_ref[...], waug_ref[...], preferred_element_type=jnp.float32)

    @pl.when(k == pl.num_programs(1) - 1)
    def _():
        h = jnp.tanh(acc_ref[...] + be1_ref[...])
        h = jnp.tanh(jnp.dot(h, we2_ref[...], preferred_element_type=jnp.float32) + be2_ref[...])
        # GCNConv applies its weight before aggregation -> push Wg1 into this per-node kernel;
        # D^{-1/2} (right factor) is applied here so the streamed A stays exact integer counts.
        m1 = jnp.dot(h, wg1_ref[...], preferred_element_type=jnp.float32)
        m1_ref[...] = (dinv_ref[...] * m1).astype(m1_ref.dtype)


def gcn1_kernel(a_ref, m1_ref, dinv_ref, bg1_ref, wg2_ref, m2_ref, acc_ref):
    """M2 = dinv * (relu(dinv*(A_cnt @ M1) + b1) @ Wg2); M1 is VMEM-resident (sliced by k)."""
    k = pl.program_id(1)
    bk = a_ref.shape[1]

    @pl.when(k == 0)
    def _():
        acc_ref[...] = jnp.zeros_like(acc_ref)

    koff = pl.multiple_of(k * bk, bk)
    acc_ref[...] += jnp.dot(a_ref[...], m1_ref[pl.ds(koff, bk), :],
                            preferred_element_type=jnp.float32)

    @pl.when(k == pl.num_programs(1) - 1)
    def _():
        h = jnp.maximum(dinv_ref[...] * acc_ref[...] + bg1_ref[...], 0.0)   # relu; dropout==id (eval)
        m2_ref[...] = (dinv_ref[...] *
                       jnp.dot(h, wg2_ref[...], preferred_element_type=jnp.float32)
                       ).astype(m2_ref.dtype)


def gcn2_pred_kernel(a_ref, m2_ref, dinv_ref, bg2_ref, wp1_ref, bp1_ref, wp2_ref, bp2_ref,
                     o_ref, acc_ref):
    """out = MLP_pred(relu(dinv*(A_cnt @ M2) + b2)); M2 is VMEM-resident (sliced by k)."""
    k = pl.program_id(1)
    bk = a_ref.shape[1]

    @pl.when(k == 0)
    def _():
        acc_ref[...] = jnp.zeros_like(acc_ref)

    koff = pl.multiple_of(k * bk, bk)
    acc_ref[...] += jnp.dot(a_ref[...], m2_ref[pl.ds(koff, bk), :],
                            preferred_element_type=jnp.float32)

    @pl.when(k == pl.num_programs(1) - 1)
    def _():
        h = jnp.maximum(dinv_ref[...] * acc_ref[...] + bg2_ref[...], 0.0)   # relu; dropout==id (eval)
        h = jnp.tanh(jnp.dot(h, wp1_ref[...], preferred_element_type=jnp.float32) + bp1_ref[...])
        o = jnp.tanh(jnp.dot(h, wp2_ref[...], preferred_element_type=jnp.float32) + bp2_ref[...])
        o_ref[...] = o.astype(o_ref.dtype)


# --------------------------------------------------------------------------------------
# Plain-JAX glue
# --------------------------------------------------------------------------------------
def _counts_and_dinv(edge_index, n, n_pad, dtype):
    """Adjacency as exact (+remaining self-loop) edge counts, padded, plus D^{-1/2}.

    Scatter-add directly into the padded storage-dtype buffer (single pass); small integer
    counts are exact in bf16. Degrees are accumulated in f32. dinv is 0 on padded rows.
    """
    src, dst = edge_index[0], edge_index[1]
    A = jnp.zeros((n_pad, n_pad), dtype).at[dst, src].add(jnp.ones_like(src, dtype=dtype))
    idx = jnp.arange(n)
    needs_loop = (A[idx, idx] == 0).astype(dtype)          # add_remaining_self_loops
    A = A.at[idx, idx].add(needs_loop)
    deg = A.sum(axis=1, dtype=jnp.float32)                 # (n_pad,)
    dinv = jnp.where(deg > 0.0, lax.rsqrt(jnp.maximum(deg, 1e-12)), 0.0)[:, None]
    return A, dinv.astype(jnp.float32)


def _pad_rows_cols(w, rows, cols):
    out = jnp.zeros((rows, cols), w.dtype)
    return out.at[:w.shape[0], :w.shape[1]].set(w)


def _streamed_spec(shape, index_map, depth=3):
    """BlockSpec for the dominant streamed input with deeper pipelining when supported."""
    try:
        return pl.BlockSpec(shape, index_map, pipeline_mode=pl.Buffered(depth))
    except Exception:  # older/newer API without pipeline_mode -> default double-buffering
        return pl.BlockSpec(shape, index_map)


def _mosaic_params(dim_sem, bufs):
    """Per-buffer VMEM budget: (shape, dtype, buffer_count) triples + headroom, capped per chip."""
    need = sum(math.prod(s) * np.dtype(d).itemsize * c for s, d, c in bufs) + (4 << 20)
    cap = 48 << 20                                   # safe on every generation (v7x: 64 MiB/TC)
    try:
        cap = int(pltpu.get_tpu_info().vmem_capacity_bytes) * 3 // 4
    except Exception:
        pass
    limit = int(min(max(need, 16 << 20), cap))
    return pltpu.CompilerParams(dimension_semantics=dim_sem, vmem_limit_bytes=limit)


def init_params(key):
    """Deterministic synthetic parameters; Linear weights stored as (in, out)."""
    ks = jax.random.split(key, 16)
    p = {}
    p["R"]   = jax.random.uniform(ks[0], (NUM_SUBREDDITS, SUB_REP_DIM), jnp.float32)
    d_in = NODE_FEATURES + SUB_REP_DIM
    p["we1"] = jax.random.normal(ks[1], (d_in, EMBED_HIDDEN), jnp.float32) * 0.2
    p["be1"] = jax.random.normal(ks[2], (1, EMBED_HIDDEN), jnp.float32) * 0.05
    p["we2"] = jax.random.normal(ks[3], (EMBED_HIDDEN, GCN_DIM), jnp.float32) * 0.2
    p["be2"] = jax.random.normal(ks[4], (1, GCN_DIM), jnp.float32) * 0.05
    p["wg1"] = jax.random.normal(ks[5], (GCN_DIM, GCN_DIM), jnp.float32) * 0.2
    p["bg1"] = jax.random.normal(ks[6], (1, GCN_DIM), jnp.float32) * 0.05
    p["wg2"] = jax.random.normal(ks[7], (GCN_DIM, GCN_DIM), jnp.float32) * 0.2
    p["bg2"] = jax.random.normal(ks[8], (1, GCN_DIM), jnp.float32) * 0.05
    p["wp1"] = jax.random.normal(ks[9], (GCN_DIM, PRED_HIDDEN), jnp.float32) * 0.2
    p["bp1"] = jax.random.normal(ks[10], (1, PRED_HIDDEN), jnp.float32) * 0.05
    p["wp2"] = jax.random.normal(ks[11], (PRED_HIDDEN, OUT_DIM), jnp.float32) * 0.2
    p["bp2"] = jax.random.normal(ks[12], (1, OUT_DIM), jnp.float32) * 0.05
    return p


# --------------------------------------------------------------------------------------
# Forward
# --------------------------------------------------------------------------------------
def reddit_skip_forward(x, edge_index, activity, params, *,
                        block_n=512, block_k=2048, block_n_e=256, block_k_sub=2048):
    """Inference forward of RedditSkip.

    block_n / block_k   : output-row tile / A-column tile for the aggregation kernels.
    block_n_e / block_k_sub : row tile / (subreddit+feature)-K tile for the embed kernel
                              (decoupled so large A tiles don't force a huge S tile).
    """
    n = x.shape[0]
    nsub = activity.shape[1]
    f32, bf16 = jnp.float32, jnp.bfloat16

    # clamp tiles to the padded problem so small demos keep valid (8,128)-aligned blocks
    block_k = min(block_k, _round_up(n, LANE))
    block_n = min(block_n, block_k)
    block_n_e = min(block_n_e, block_n)
    k_aug = nsub + NODE_FEATURES
    block_k_sub = min(block_k_sub, _round_up(k_aug, LANE))

    L = math.lcm(block_n, block_k, block_n_e)
    n_pad = _round_up(n, L)
    k_aug_pad = _round_up(k_aug, block_k_sub)

    # ---- adjacency as exact integer counts; D^{-1/2} factored out and kept in f32 ----
    A_pad, dinv_pad = _counts_and_dinv(edge_index, n, n_pad, bf16)

    # ---- fold x into the subreddit matmul: [S | x] @ [[R @ We1_sub]; [We1_x]] ----
    s_aug = jnp.concatenate([activity.astype(f32), x.astype(f32)], axis=1)   # (n, nsub+F)
    S_pad = jnp.zeros((n_pad, k_aug_pad), bf16).at[:n, :k_aug].set(s_aug.astype(bf16))
    w_aug = jnp.concatenate([jnp.dot(params["R"], params["we1"][NODE_FEATURES:]),
                             params["we1"][:NODE_FEATURES]], axis=0)         # (nsub+F, 64)
    W_aug = jnp.zeros((k_aug_pad, EMBED_HIDDEN), bf16).at[:k_aug, :].set(w_aug.astype(bf16))

    # lane-pad small weights/biases so every HBM-written tensor is 128 lanes wide
    wg1_p = _pad_rows_cols(params["wg1"], GCN_DIM, LANE)         # (32, 128)
    bg1_p = _pad_rows_cols(params["bg1"], 1, LANE)
    wg2_p = _pad_rows_cols(params["wg2"], LANE, LANE)
    bg2_p = _pad_rows_cols(params["bg2"], 1, LANE)
    wp1_p = _pad_rows_cols(params["wp1"], LANE, PRED_HIDDEN)
    wp2_p = _pad_rows_cols(params["wp2"], PRED_HIDDEN, LANE)
    bp2_p = _pad_rows_cols(params["bp2"], 1, LANE)
    bp1   = params["bp1"]

    n_blocks   = n_pad // block_n
    n_blocks_e = n_pad // block_n_e
    k_blocks   = n_pad // block_k
    ks_blocks  = k_aug_pad // block_k_sub
    const = lambda i, k: (0, 0)

    # ---- kernel 1: per-node embed (row grid x K over subreddit+feature axis) ----
    m1 = pl.pallas_call(
        embed_kernel,
        out_shape=jax.ShapeDtypeStruct((n_pad, LANE), bf16),
        grid_spec=pltpu.PrefetchScalarGridSpec(
            num_scalar_prefetch=0,
            grid=(n_blocks_e, ks_blocks),
            in_specs=[
                pl.BlockSpec((block_n_e, block_k_sub), lambda i, k: (i, k)),
                pl.BlockSpec((block_k_sub, EMBED_HIDDEN), lambda i, k: (k, 0)),
                pl.BlockSpec((block_n_e, 1), lambda i, k: (i, 0)),
                pl.BlockSpec((1, EMBED_HIDDEN), const),
                pl.BlockSpec((EMBED_HIDDEN, GCN_DIM), const),
                pl.BlockSpec((1, GCN_DIM), const),
                pl.BlockSpec((GCN_DIM, LANE), const),
            ],
            out_specs=pl.BlockSpec((block_n_e, LANE), lambda i, k: (i, 0)),
            scratch_shapes=[pltpu.VMEM((block_n_e, EMBED_HIDDEN), f32)],
        ),
        compiler_params=_mosaic_params(
            ("parallel", "arbitrary"),
            [((block_n_e, block_k_sub), bf16, 2),
             ((block_k_sub, EMBED_HIDDEN), bf16, 2),
             ((block_n_e, 1), f32, 2),
             ((block_n_e, LANE), bf16, 2),
             ((1, EMBED_HIDDEN), f32, 1), ((EMBED_HIDDEN, GCN_DIM), f32, 1),
             ((1, GCN_DIM), f32, 1), ((GCN_DIM, LANE), f32, 1),
             ((block_n_e, EMBED_HIDDEN), f32, 1)]),
    )(S_pad, W_aug, dinv_pad, params["be1"], params["we2"], params["be2"], wg1_p)

    # ---- kernel 2: GCN1 aggregation (A streamed, M1 VMEM-resident) ----
    m2 = pl.pallas_call(
        gcn1_kernel,
        out_shape=jax.ShapeDtypeStruct((n_pad, LANE), bf16),
        grid_spec=pltpu.PrefetchScalarGridSpec(
            num_scalar_prefetch=0,
            grid=(n_blocks, k_blocks),
            in_specs=[
                _streamed_spec((block_n, block_k), lambda i, k: (i, k)),
                pl.BlockSpec((n_pad, LANE), const),            # M1 resident in VMEM
                pl.BlockSpec((block_n, 1), lambda i, k: (i, 0)),
                pl.BlockSpec((1, LANE), const),
                pl.BlockSpec((LANE, LANE), const),
            ],
            out_specs=pl.BlockSpec((block_n, LANE), lambda i, k: (i, 0)),
            scratch_shapes=[pltpu.VMEM((block_n, LANE), f32)],
        ),
        compiler_params=_mosaic_params(
            ("parallel", "arbitrary"),
            [((block_n, block_k), bf16, 3),
             ((n_pad, LANE), bf16, 1),
             ((block_n, 1), f32, 2),
             ((block_n, LANE), bf16, 2),
             ((1, LANE), f32, 1), ((LANE, LANE), f32, 1),
             ((block_n, LANE), f32, 1)]),
    )(A_pad, m1, dinv_pad, bg1_p, wg2_p)

    # ---- kernel 3: GCN2 aggregation + MLP_pred, lane-dense (128-wide) output ----
    out_pad = pl.pallas_call(
        gcn2_pred_kernel,
        out_shape=jax.ShapeDtypeStruct((n_pad, LANE), f32),
        grid_spec=pltpu.PrefetchScalarGridSpec(
            num_scalar_prefetch=0,
            grid=(n_blocks, k_blocks),
            in_specs=[
                _streamed_spec((block_n, block_k), lambda i, k: (i, k)),
                pl.BlockSpec((n_pad, LANE), const),            # M2 resident in VMEM
                pl.BlockSpec((block_n, 1), lambda i, k: (i, 0)),
                pl.BlockSpec((1, LANE), const),
                pl.BlockSpec((LANE, PRED_HIDDEN), const),
                pl.BlockSpec((1, PRED_HIDDEN), const),
                pl.BlockSpec((PRED_HIDDEN, LANE), const),
                pl.BlockSpec((1, LANE), const),
            ],
            out_specs=pl.BlockSpec((block_n, LANE), lambda i, k: (i, 0)),
            scratch_shapes=[pltpu.VMEM((block_n, LANE), f32)],
        ),
        compiler_params=_mosaic_params(
            ("parallel", "arbitrary"),
            [((block_n, block_k), bf16, 3),
             ((n_pad, LANE), bf16, 1),
             ((block_n, 1), f32, 2),
             ((block_n, LANE), f32, 2),
             ((1, LANE), f32, 1), ((LANE, PRED_HIDDEN), f32, 1), ((1, PRED_HIDDEN), f32, 1),
             ((PRED_HIDDEN, LANE), f32, 1), ((1, LANE), f32, 1),
             ((block_n, LANE), f32, 1)]),
    )(A_pad, m2, dinv_pad, bg2_p, wp1_p, bp1, wp2_p, bp2_p)

    # kernel stores a lane-dense 128-wide block; real prediction is column 0.
    return out_pad[:n, :OUT_DIM]


if __name__ == "__main__":
    key = jax.random.PRNGKey(0)
    k_act, k_x, k_edge, k_par = jax.random.split(key, 4)

    N_NODES = 200
    N_EDGES = 800

    # node activity over subreddits (the `reddit_activity` ctor arg == self.S)
    activity = jax.random.uniform(k_act, (N_NODES, NUM_SUBREDDITS), jnp.float32)
    # raw node features
    x = jax.random.normal(k_x, (N_NODES, NODE_FEATURES), jnp.float32)
    # random directed edge list (2, E)
    edge_index = jax.random.randint(k_edge, (2, N_EDGES), 0, N_NODES, dtype=jnp.int32)

    params = init_params(k_par)

    # small blocks so the demo exercises multi-step row AND reduction grids (N padded to 256)
    out = reddit_skip_forward(x, edge_index, activity, params,
                              block_n=64, block_k=128, block_n_e=64, block_k_sub=128)
    out = jax.block_until_ready(out)
    assert out.shape == (N_NODES, OUT_DIM)
    assert bool(jnp.all(jnp.isfinite(out)))
    print("KERNEL_OK")
</pallas_src>

<mosaic_0001>
module attributes {stable_mosaic.version = 11 : i64} {
  func.func @embed_kernel(%arg0: i32, %arg1: i32, %arg2: memref<64x128xbf16, #tpu.memory_space<vmem>>, %arg3: memref<128x64xbf16, #tpu.memory_space<vmem>>, %arg4: memref<64x1xf32, #tpu.memory_space<vmem>>, %arg5: memref<1x64xf32, #tpu.memory_space<vmem>>, %arg6: memref<64x32xf32, #tpu.memory_space<vmem>>, %arg7: memref<1x32xf32, #tpu.memory_space<vmem>>, %arg8: memref<32x128xf32, #tpu.memory_space<vmem>>, %arg9: memref<64x128xbf16, #tpu.memory_space<vmem>>, %arg10: memref<64x64xf32, #tpu.memory_space<vmem>>) attributes {dimension_semantics = [#tpu.dimension_semantics<parallel>, #tpu.dimension_semantics<arbitrary>], iteration_bounds = array<i64: 4, 2>, scalar_prefetch = 0 : i64, scratch_operands = 1 : i64, tpu.core_type = #tpu.core_type<tc>, window_params = [{transform_indices = @transform_0, window_bounds = array<i64: 64, 128>}, {transform_indices = @transform_1, window_bounds = array<i64: 128, 64>}, {transform_indices = @transform_2, window_bounds = array<i64: 64, 1>}, {pipeline_mode = #tpu.pipeline_mode<synchronous>, transform_indices = @transform_3, window_bounds = array<i64: 1, 64>}, {pipeline_mode = #tpu.pipeline_mode<synchronous>, transform_indices = @transform_4, window_bounds = array<i64: 64, 32>}, {pipeline_mode = #tpu.pipeline_mode<synchronous>, transform_indices = @transform_5, window_bounds = array<i64: 1, 32>}, {pipeline_mode = #tpu.pipeline_mode<synchronous>, transform_indices = @transform_6, window_bounds = array<i64: 32, 128>}, {transform_indices = @transform_7, window_bounds = array<i64: 64, 128>}]} {
    %c0_i32 = arith.constant 0 : i32
    %0 = arith.cmpi eq, %arg1, %c0_i32 : i32
    %1 = arith.extui %0 : i1 to i32
    %c0_i32_0 = arith.constant 0 : i32
    %2 = arith.cmpi ne, %1, %c0_i32_0 : i32
    scf.if %2 {
      %cst_9 = arith.constant 0.000000e+00 : f32
      %12 = vector.broadcast %cst_9 : f32 to vector<64x64xf32>
      %c0_10 = arith.constant 0 : index
      %c0_11 = arith.constant 0 : index
      %13 = vector.load %arg10[%c0_10, %c0_11] : memref<64x64xf32, #tpu.memory_space<vmem>>, vector<64x64xf32>
      tpu.vector_store %arg10[%c0_10, %c0_11], %12 {strides = array<i32>} : memref<64x64xf32, #tpu.memory_space<vmem>>, vector<64x64xf32>,
    } else {
    }
    %c0 = arith.constant 0 : index
    %c0_1 = arith.constant 0 : index
    %3 = vector.load %arg10[%c0, %c0_1] : memref<64x64xf32, #tpu.memory_space<vmem>>, vector<64x64xf32>
    %c0_2 = arith.constant 0 : index
    %c0_3 = arith.constant 0 : index
    %4 = vector.load %arg2[%c0_2, %c0_3] : memref<64x128xbf16, #tpu.memory_space<vmem>>, vector<64x128xbf16>
    %c0_4 = arith.constant 0 : index
    %c0_5 = arith.constant 0 : index
    %5 = vector.load %arg3[%c0_4, %c0_5] : memref<128x64xbf16, #tpu.memory_space<vmem>>, vector<128x64xbf16>
    %cst = arith.constant dense<0.000000e+00> : vector<64x64xf32>
    %6 = tpu.matmul %4, %5, %cst {dimension_numbers = #tpu.dot_dimension_numbers<[1], [0], [0], [1], [0, 0, 1, 1], [], []>} : vector<64x128xbf16>, vector<128x64xbf16>, vector<64x64xf32> -> vector<64x64xf32>
    %7 = arith.addf %3, %6 : vector<64x64xf32>
    %c0_6 = arith.constant 0 : index
    %c0_7 = arith.constant 0 : index
    %8 = vector.load %arg10[%c0_6, %c0_7] : memref<64x64xf32, #tpu.memory_space<vmem>>, vector<64x64xf32>
    tpu.vector_store %arg10[%c0_6, %c0_7], %7 {strides = array<i32>} : memref<64x64xf32, #tpu.memory_space<vmem>>, vector<64x64xf32>,
    %c1_i32 = arith.constant 1 : i32
    %9 = arith.cmpi eq, %arg1, %c1_i32 : i32
    %10 = arith.extui %9 : i1 to i32
    %c0_i32_8 = arith.constant 0 : i32
    %11 = arith.cmpi ne, %10, %c0_i32_8 : i32
    scf.if %11 {
      %c0_9 = arith.constant 0 : index
      %c0_10 = arith.constant 0 : index
      %12 = vector.load %arg10[%c0_9, %c0_10] : memref<64x64xf32, #tpu.memory_space<vmem>>, vector<64x64xf32>
      %c0_11 = arith.constant 0 : index
      %c0_12 = arith.constant 0 : index
      %13 = vector.load %arg5[%c0_11, %c0_12] : memref<1x64xf32, #tpu.memory_space<vmem>>, vector<1x64xf32>
      %14 = vector.broadcast %13 : vector<1x64xf32> to vector<64x64xf32>
      %15 = arith.addf %12, %14 : vector<64x64xf32>
      %16 = math.tanh %15 : vector<64x64xf32>
      %c0_13 = arith.constant 0 : index
      %c0_14 = arith.constant 0 : index
      %17 = vector.load %arg6[%c0_13, %c0_14] : memref<64x32xf32, #tpu.memory_space<vmem>>, vector<64x32xf32>
      %cst_15 = arith.constant dense<0.000000e+00> : vector<64x32xf32>
      %18 = tpu.matmul %16, %17, %cst_15 {dimension_numbers = #tpu.dot_dimension_numbers<[1], [0], [0], [1], [0, 0, 1, 1], [], []>} : vector<64x64xf32>, vector<64x32xf32>, vector<64x32xf32> -> vector<64x32xf32>
      %c0_16 = arith.constant 0 : index
      %c0_17 = arith.constant 0 : index
      %19 = vector.load %arg7[%c0_16, %c0_17] : memref<1x32xf32, #tpu.memory_space<vmem>>, vector<1x32xf32>
      %20 = vector.broadcast %19 : vector<1x32xf32> to vector<64x32xf32>
      %21 = arith.addf %18, %20 : vector<64x32xf32>
      %22 = math.tanh %21 : vector<64x32xf32>
      %c0_18 = arith.constant 0 : index
      %c0_19 = arith.constant 0 : index
      %23 = vector.load %arg8[%c0_18, %c0_19] : memref<32x128xf32, #tpu.memory_space<vmem>>, vector<32x128xf32>
      %cst_20 = arith.constant dense<0.000000e+00> : vector<64x128xf32>
      %24 = tpu.matmul %22, %23, %cst_20 {dimension_numbers = #tpu.dot_dimension_numbers<[1], [0], [0], [1], [0, 0, 1, 1], [], []>} : vector<64x32xf32>, vector<32x128xf32>, vector<64x128xf32> -> vector<64x128xf32>
      %c0_21 = arith.constant 0 : index
      %c0_22 = arith.constant 0 : index
      %25 = vector.load %arg4[%c0_21, %c0_22] : memref<64x1xf32, #tpu.memory_space<vmem>>, vector<64x1xf32>
      %26 = vector.broadcast %25 : vector<64x1xf32> to vector<64x128xf32>
      %27 = arith.mulf %26, %24 : vector<64x128xf32>
      %28 = arith.truncf %27 : vector<64x128xf32> to vector<64x128xbf16>
      %c0_23 = arith.constant 0 : index
      %c0_24 = arith.constant 0 : index
      %29 = vector.load %arg9[%c0_23, %c0_24] : memref<64x128xbf16, #tpu.memory_space<vmem>>, vector<64x128xbf16>
      tpu.vector_store %arg9[%c0_23, %c0_24], %28 {strides = array<i32>} : memref<64x128xbf16, #tpu.memory_space<vmem>>, vector<64x128xbf16>,
    } else {
    }
    return
  }
  func.func @transform_0(%arg0: i32, %arg1: i32) -> (i32, i32) {
    %c0_i32 = arith.constant 0 : i32
    return %arg0, %arg1 : i32, i32
  }
  func.func @transform_1(%arg0: i32, %arg1: i32) -> (i32, i32) {
    %c0_i32 = arith.constant 0 : i32
    %c0_i32_0 = arith.constant 0 : i32
    return %arg1, %c0_i32 : i32, i32
  }
  func.func @transform_2(%arg0: i32, %arg1: i32) -> (i32, i32) {
    %c0_i32 = arith.constant 0 : i32
    %c0_i32_0 = arith.constant 0 : i32
    return %arg0, %c0_i32 : i32, i32
  }
  func.func @transform_3(%arg0: i32, %arg1: i32) -> (i32, i32) {
    %c0_i32 = arith.constant 0 : i32
    %c0_i32_0 = arith.constant 0 : i32
    %c0_i32_1 = arith.constant 0 : i32
    return %c0_i32, %c0_i32_0 : i32, i32
  }
  func.func @transform_4(%arg0: i32, %arg1: i32) -> (i32, i32) {
    %c0_i32 = arith.constant 0 : i32
    %c0_i32_0 = arith.constant 0 : i32
    %c0_i32_1 = arith.constant 0 : i32
    return %c0_i32, %c0_i32_0 : i32, i32
  }
  func.func @transform_5(%arg0: i32, %arg1: i32) -> (i32, i32) {
    %c0_i32 = arith.constant 0 : i32
    %c0_i32_0 = arith.constant 0 : i32
    %c0_i32_1 = arith.constant 0 : i32
    return %c0_i32, %c0_i32_0 : i32, i32
  }
  func.func @transform_6(%arg0: i32, %arg1: i32) -> (i32, i32) {
    %c0_i32 = arith.constant 0 : i32
    %c0_i32_0 = arith.constant 0 : i32
    %c0_i32_1 = arith.constant 0 : i32
    return %c0_i32, %c0_i32_0 : i32, i32
  }
  func.func @transform_7(%arg0: i32, %arg1: i32) -> (i32, i32) {
    %c0_i32 = arith.constant 0 : i32
    %c0_i32_0 = arith.constant 0 : i32
    return %arg0, %c0_i32 : i32, i32
  }
}

</mosaic_0001>

<bundles_post_ra>
// kernel: tpu_custom_call.1
= control target key start
LH: loop header
LB: loop body
LE: loop exit
PB: predicated region body
PF: predicated region fallthrough
CT: control target
= control target key end

     0   :  { %s1966_s0 = inlined_call_operand.vmem [shape: bf16[256,256], index: 0, kind: input, shape index: {}]   ;;  %s1967_s1 = inlined_call_operand.vmem [shape: bf16[256,64], index: 1, kind: input, shape index: {}]   ;;  %s1968_s2 = inlined_call_operand.vmem [shape: f32[256,1], index: 2, kind: input, shape index: {}]   ;;  %s1969_s3 = inlined_call_operand.vmem [shape: f32[1,64], index: 3, kind: input, shape index: {}]   ;;  %s1970_s4 = inlined_call_operand.vmem [shape: f32[64,32], index: 4, kind: input, shape index: {}]   ;;  %s1971_s5 = inlined_call_operand.vmem [shape: f32[1,32], index: 5, kind: input, shape index: {}]   ;;  %s1972_s6 = inlined_call_operand.vmem [shape: f32[32,128], index: 6, kind: input, shape index: {}]   ;;  %s1973_s7 = inlined_call_operand.hbm [shape: bf16[256,128], index: 7, kind: output, shape index: {}]  }
   0x1   :  { %1980 = sst [smem:[#allocation12_spill]] %s1966_s0 }
   0x2   :  { %12 = vsyncpa [#allocation5], 0 }
   0x3   :  { %14 = vsyncpa [#allocation5 + $0x1], 0  ;;  %s1684_s24 = smov 0   ;;  %s1686_s25 = smov 0  }
   0x4   :  { %s1688_s26 = smov 0   ;;  %s1690_s27 = smov 0  }
   0x5   :  { %s1692_s28 = smov 0   ;;  %s1694_s29 = smov 0  }
   0x6   :  { %s1696_s30 = smov 0   ;;  %s1698_s8 = smov 0  }
   0x7   :  { %s1700_s9 = smov 0   ;;  %s1702_s10 = smov 0  }
   0x8 LB: > { %1981 = sst [smem:[#allocation7_spill]] %s1629_s8  ;;  %s1145_s11 = sadd.s32 4294967295, %s1637_s10   ;;  %s1637_s10 = sphi %s1702_s10, %s20_s10   ;;  %s1633_s9 = sphi %s1700_s9, %s1995_s9   ;;  %s1629_s8 = sphi %s1698_s8, %s1994_s8   ;;  %s1625_s30 = sphi %s1696_s30, %s1993_s30   ;;  %s1621_s29 = sphi %s1694_s29, %s1992_s29   ;;  %s1617_s28 = sphi %s1692_s28, %s2000_s28   ;;  %s1613_s27 = sphi %s1690_s27, %s1999_s27   ;;  %s1609_s26 = sphi %s1688_s26, %s1998_s26   ;;  %s1605_s25 = sphi %s1686_s25, %s1997_s25   ;;  %s1601_s24 = sphi %s1684_s24, %s1996_s24  }
   0x9   : > { %1982 = sst [smem:[#allocation8_spill]] %s1633_s9  ;;  %s1146_s12 = sadd.s32 4294967294, %s1637_s10  }
   0xa   : > { %s29_s13 = sadd.s32 1, %s1629_s8  ;;  %s32_s14 = sadd.s32 1, %s1633_s9 }
   0xb   : > { %p30_p0 = scmp.ge.s32.totalorder %s29_s13, 2  ;;  %s41_s15 = sadd.s32 1, %s1617_s28 }
   0xc   : > { %p48_p1 = scmp.ne.s32.totalorder %s1617_s28, %s1613_s27  ;;  %p49_p2 = scmp.eq.s32.totalorder %s1637_s10, 0 }
   0xd   : > { %s2002_s13 = smov (%p30_p0, %s29_s13), 0  ;;  %s2004_s14 = smov (!%p30_p0, %s32_s14), %s1633_s9 }
   0xe   : > { %1983 = sst [smem:[#allocation9_spill]] %s2002_s13  ;;  %s37_s16 = ssub.s32 %s1629_s8, %s2002_s13 }
   0xf   : > { %p1747_p3 = por %p49_p2, %p48_p1  ;;  %p34_p4 = scmp.ge.s32.totalorder %s2004_s14, 4 }
  0x10   : > { %s203_s18 = sadd.s32 1, %s1609_s26  ;;  %p213_p5 = scmp.ne.s32.totalorder %s1609_s26, %s1605_s25 }
  0x11   : > { %p214_p6 = scmp.eq.s32.totalorder %s1145_s11, 7  ;;  %s2006_s14 = smov (%p34_p4, %s2004_s14), 0 }
  0x12   : > { %1985 = sst [smem:[#allocation10_spill]] %s2006_s14  ;;  %p219_p8 = scmp.ne.s32.totalorder %s1605_s25, %s1601_s24 }
  0x13   : > { %p1756_p7 = por %p214_p6, %p213_p5  ;;  %s36_s20 = ssub.s32 %s1633_s9, %s2006_s14 }
  0x14   : > { %p220_p9 = scmp.eq.s32.totalorder %s1146_s12, 7  ;;  %s38_s21 = sor.u32 %s37_s16, %s36_s20 }
  0x15   : > { %p201_p10 = scmp.eq.s32.totalorder %s36_s20, 0  ;;  %p39_p11 = scmp.eq.s32.totalorder %s38_s21, 0 }
  0x16   : > { %p1764_p12 = por %p220_p9, %p219_p8  ;;  %p1148_p13 = scmp.ge.s32.totalorder %s1637_s10, 8 }
  0x17   : > { %s1769_s23 = scalar_select %p201_p10, %s1609_s26, %s203_s18  }
  0x18   : > { %s1987_s22 = scalar_select %p1764_p12, 1, 0 }
  0x19   : > { %s1772_s11 = scalar_select %p39_p11, %s1617_s28, %s41_s15  }
  0x1a   : > { %1988 = sst [smem:[#allocation11_spill]] %s1987_s22  ;;  %248 = sbr.rel (%p1148_p13) target bundleno = 48 (0x30), region = 32 }
  0x21   : > { %251 = sbr.rel (!%p1747_p3) target bundleno = 48 (0x30), region = 36  ;;  %s253_s12 = sand.u32 (%p1747_p3), 1, %s1617_s28  }
  0x22   : > { %s1205_s16 = sshll.u32 (%p1747_p3), %s1633_s9, 4  ;;  %s1149_s20 = sshll.u32 (%p1747_p3), %s253_s12, 5 }
  0x23   : > { %s258_s21 = sadd.s32 (%p1747_p3), %s1629_s8, %s1205_s16  ;;  %s1989_s0 = sld [smem:[#allocation12_spill]] (%p1747_p3) }
  0x24   : > { %s1152_s14 = sshll.u32 (%p1747_p3), %s258_s21, 2  ;;  %s255_s15 = scalar_lea.vmem (%p1747_p3), [#allocation3], %s1149_s20 }
  0x29   : > { %s260_s18 = scalar_lea.vmem %s1989_s0, %s1152_s14 }
  0x2a   : > { %v276_v0 = vld [vmem:[%s260_s18] sm:$0xf]  ;;  %v278_v1 = vld [vmem:[%s260_s18 + $0x8] sm:$0xf]  ;;  %v280_v2 = vld [vmem:[%s260_s18 + $0x10] sm:$0xf] }
  0x2b   : > { %277 = vst [vmem:[%s255_s15] sm:$0xf] %v276_v0  ;;  %279 = vst [vmem:[%s255_s15 + $0x4] sm:$0xf] %v278_v1  ;;  %v282_v3 = vld [vmem:[%s260_s18 + $0x18] sm:$0xf] }
  0x2c   : > { %281 = vst [vmem:[%s255_s15 + $0x8] sm:$0xf] %v280_v2  ;;  %v284_v4 = vld [vmem:[%s260_s18 + $0x20] sm:$0xf]  ;;  %v286_v5 = vld [vmem:[%s260_s18 + $0x28] sm:$0xf] }
  0x2d   : > { %283 = vst [vmem:[%s255_s15 + $0xc] sm:$0xf] %v282_v3  ;;  %285 = vst [vmem:[%s255_s15 + $0x10] sm:$0xf] %v284_v4  ;;  %v288_v6 = vld [vmem:[%s260_s18 + $0x30] sm:$0xf] }
  0x2e   : > { %287 = vst [vmem:[%s255_s15 + $0x14] sm:$0xf] %v286_v5  ;;  %v290_v7 = vld [vmem:[%s260_s18 + $0x38] sm:$0xf]  ;;  %289 = vst [vmem:[%s255_s15 + $0x18] sm:$0xf] %v288_v6 }
  0x2f   : > { %291 = vst [vmem:[%s255_s15 + $0x1c] sm:$0xf] %v290_v7 }
  0x30 PF: > { %p1153_p0 = scmp.ge.s32.totalorder %s1637_s10, 1  ;;  %p347_p1 = scmp.lt.s32.totalorder %s1637_s10, 9 }
  0x32   : > { %p348_p2 = pnand %p1153_p0, %p347_p1 }
  0x33   : > { %s354_s13 = sand.u32 (!%p348_p2), 1, %s1613_s27   ;;  %s1979_s14 = sand.u32 (!%p348_p2), 1, %s1605_s25  }
  0x34   : > { %351 = sbr.rel (%p348_p2) target bundleno = 823 (0x337), region = 85  ;;  %s1154_s17 = sshll.u32 (!%p348_p2), %s354_s13, 5 }
  0x35   : > { %s1155_s22 = sshll.u32 (!%p348_p2), %s1979_s14, 5  ;;  %s1156_s12 = sshll.u32 (!%p348_p2), %s1621_s29, 4 }
  0x36   : > { %s1158_s16 = sshll.u32 (!%p348_p2), %s1625_s30, 3  ;;  %p397_p3 = scmp.lt.s32.totalorder (!%p348_p2), %s1156_s12, 31 }
  0x37   : > { %p403_p4 = scmp.lt.s32.totalorder (!%p348_p2), %s1158_s16, 31  ;;  %s1801_s13 = scalar_lea.vmem (!%p348_p2), [#allocation3], %s1154_s17 }
  0x38   : > { %s1803_s14 = scalar_lea.vmem (!%p348_p2), [#allocation4], %s1155_s22  ;;  %p1160_p5 = scmp.ne.s32.totalorder (!%p348_p2), %s1621_s29, 0 }
  0x3b   : > { %s2008_s12 = smov (!%p397_p3, %s1156_s12), 31  ;;  %s2010_s16 = smov (!%p403_p4, %s1158_s16), 31 }
  0x3c   : > { %s1157_s20 = sshll.u32 %s2008_s12, 2  ;;  %s1159_s0 = sshll.u32 %s2010_s16, 3  ;;  %vm414_vm0 = vcmask (!%p1160_p5), 523264   ;;  %v1639_v8 = vmov (!%p1160_p5), 0.0  }
  0x3d   : > { %s1794_s15 = scalar_lea.vmem %s1967_s1, %s1157_s20  ;;  %s1799_s27 = scalar_lea.vmem %s1968_s2, %s1159_s0  ;;  %415 = vst.msk [vmem:[#allocation2] sm:$0xff] (!%p1160_p5), %vm414_vm0, %v1639_v8  ;;  %416 = vst.msk [vmem:[#allocation2 + $0x8] sm:$0xff] (!%p1160_p5), %vm414_vm0, %v1639_v8 }
  0x3e   : > { %413 = sbr.rel (%p1160_p5) target bundleno = 69 (0x45), region = 93  ;;  %417 = vst.msk [vmem:[#allocation2 + $0x10] sm:$0xff] (!%p1160_p5), %vm414_vm0, %v1639_v8  ;;  %418 = vst.msk [vmem:[#allocation2 + $0x18] sm:$0xff] (!%p1160_p5), %vm414_vm0, %v1639_v8 }
  0x3f   : > { %419 = vst.msk [vmem:[#allocation2 + $0x20] sm:$0xff] (!%p1160_p5), %vm414_vm0, %v1639_v8  ;;  %420 = vst.msk [vmem:[#allocation2 + $0x28] sm:$0xff] (!%p1160_p5), %vm414_vm0, %v1639_v8 }
  0x40   : > { %421 = vst.msk [vmem:[#allocation2 + $0x30] sm:$0xff] (!%p1160_p5), %vm414_vm0, %v1639_v8  ;;  %422 = vst.msk [vmem:[#allocation2 + $0x38] sm:$0xff] (!%p1160_p5), %vm414_vm0, %v1639_v8 }
  0x45 PF: > { %v1481_v9 = vld [vmem:[%s1794_s15] sm:$0xff]   ;;  %v1482_v10 = vld [vmem:[%s1794_s15 + $0x8] sm:$0xff]   ;;  %v1483_v11 = vld [vmem:[%s1794_s15 + $0x10] sm:$0xff]   ;;  %vm600_vm1 = vcmask 523264   ;;  %p1173_p6 = scmp.ne.s32.totalorder %s1621_s29, 1 }
  0x46   : > { %1278 = vmatprep.subr.bf16.mxu0 %v1481_v9  ;;  %1374 = vmatprep.subr.bf16.mxu1 %v1481_v9  ;;  %v1484_v12 = vld [vmem:[%s1794_s15 + $0x18] sm:$0xff]   ;;  %v1489_v13 = vld [vmem:[%s1801_s13] sm:$0xff]   ;;  %v1490_v14 = vld [vmem:[%s1801_s13 + $0x10] sm:$0xff]   ;;  %vm800_vm2 = vcmask (!%p1173_p6), 261120  }
  0x47   : > { %1279 = vmatpush3.bf16.msra.mxu0 %v1481_v9  ;;  %1382 = vmatpush3.bf16.msra.mxu1 %v1481_v9  ;;  %v1485_v15 = vld [vmem:[%s1794_s15 + $0x20] sm:$0xff]   ;;  %v1486_v16 = vld [vmem:[%s1794_s15 + $0x28] sm:$0xff]   ;;  %v1487_v17 = vld [vmem:[%s1794_s15 + $0x30] sm:$0xff]  }
  0x48   : > { %1280 = vmatprep.subr.bf16.mxu0 %v1482_v10  ;;  %1375 = vmatprep.subr.bf16.mxu1 %v1482_v10  ;;  %v1488_v18 = vld [vmem:[%s1794_s15 + $0x38] sm:$0xff]   ;;  %v1491_v19 = vld [vmem:[%s1801_s13 + $0x8] sm:$0xff]   ;;  %v425_v21 = vld [vmem:[#allocation2 + $0x10] sm:$0xff] }
  0x49   : > { %1294 = vmatprep.mubr.bf16.mxu0 %v1489_v13  ;;  %1298 = vmatprep.mubr.bf16.mxu1 %v1490_v14  ;;  %v1492_v20 = vld [vmem:[%s1801_s13 + $0x18] sm:$0xff]   ;;  %v429_v22 = vld [vmem:[#allocation2 + $0x30] sm:$0xff]  ;;  %v423_v23 = vld [vmem:[#allocation2] sm:$0xff] }
  0x4a   : > { %v427_v24 = vld [vmem:[#allocation2 + $0x20] sm:$0xff]  ;;  %v426_v27 = vld [vmem:[#allocation2 + $0x18] sm:$0xff]  ;;  %v424_v33 = vld [vmem:[#allocation2 + $0x8] sm:$0xff] }
  0x4b   : > { %1281 = vmatpush3.bf16.msra.mxu0 %v1482_v10  ;;  %1383 = vmatpush3.bf16.msra.mxu1 %v1482_v10  ;;  %v430_v28 = vld [vmem:[#allocation2 + $0x38] sm:$0xff]  ;;  %v428_v34 = vld [vmem:[#allocation2 + $0x28] sm:$0xff]  ;;  %v644_v45 = vld [vmem:[%s1970_s4] sm:$0xff] (!%p1173_p6) }
  0x4c   : > { %1282 = vmatprep.subr.bf16.mxu0 %v1483_v11  ;;  %1376 = vmatprep.subr.bf16.mxu1 %v1483_v11  ;;  %v645_v46 = vld [vmem:[%s1970_s4 + $0x8] sm:$0xff] (!%p1173_p6)  ;;  %v646_v47 = vld [vmem:[%s1970_s4 + $0x10] sm:$0xff] (!%p1173_p6)  ;;  %v647_v49 = vld [vmem:[%s1970_s4 + $0x18] sm:$0xff] (!%p1173_p6) }
  0x4d   : > { %v1350_v48 = vpack.c.bf16 (!%p1173_p6), %v645_v46, %v644_v45  ;;  %v1354_v50 = vpack.c.bf16 (!%p1173_p6), %v647_v49, %v646_v47  ;;  %v648_v51 = vld [vmem:[%s1970_s4 + $0x20] sm:$0xff] (!%p1173_p6)  ;;  %v649_v52 = vld [vmem:[%s1970_s4 + $0x28] sm:$0xff] (!%p1173_p6)  ;;  %v650_v63 = vld [vmem:[%s1970_s4 + $0x30] sm:$0xff] (!%p1173_p6) }
  0x4e   : > { %v1174_v54 = vld [vmem:[%s1969_s3] ss:$0 sm:$0xff] (!%p1173_p6)  ;;  %v1358_v62 = vpack.c.bf16 (!%p1173_p6), %v649_v52, %v648_v51  ;;  %v651_v0 = vld [vmem:[%s1970_s4 + $0x38] sm:$0xff] (!%p1173_p6) }
  0x4f   : > { %1283 = vmatpush3.bf16.msra.mxu0 %v1483_v11  ;;  %1384 = vmatpush3.bf16.msra.mxu1 %v1483_v11  ;;  %v1362_v5 = vpack.c.bf16 (!%p1173_p6), %v651_v0, %v650_v63 }
  0x50   : > { %1284 = vmatprep.subr.bf16.mxu0 %v1484_v12  ;;  %1377 = vmatprep.subr.bf16.mxu1 %v1484_v12 }
  0x53   : > { %1285 = vmatpush3.bf16.msra.mxu0 %v1484_v12  ;;  %1385 = vmatpush3.bf16.msra.mxu1 %v1484_v12 }
  0x54   : > { %1286 = vmatprep.subr.bf16.mxu0 %v1485_v15  ;;  %1378 = vmatprep.subr.bf16.mxu1 %v1485_v15 }
  0x57   : > { %1287 = vmatpush3.bf16.msra.mxu0 %v1485_v15  ;;  %1386 = vmatpush3.bf16.msra.mxu1 %v1485_v15 }
  0x58   : > { %1288 = vmatprep.subr.bf16.mxu0 %v1486_v16  ;;  %1379 = vmatprep.subr.bf16.mxu1 %v1486_v16 }
  0x5b   : > { %1289 = vmatpush3.bf16.msra.mxu0 %v1486_v16  ;;  %1387 = vmatpush3.bf16.msra.mxu1 %v1486_v16 }
  0x5c   : > { %1290 = vmatprep.subr.bf16.mxu0 %v1487_v17  ;;  %1380 = vmatprep.subr.bf16.mxu1 %v1487_v17 }
  0x5f   : > { %1291 = vmatpush3.bf16.msra.mxu0 %v1487_v17  ;;  %1388 = vmatpush3.bf16.msra.mxu1 %v1487_v17 }
  0x60   : > { %1292 = vmatprep.subr.bf16.mxu0 %v1488_v18  ;;  %1381 = vmatprep.subr.bf16.mxu1 %v1488_v18 }
  0x63   : > { %1293 = vmatpush3.bf16.msra.mxu0 %v1488_v18  ;;  %1389 = vmatpush3.bf16.msra.mxu1 %v1488_v18  ;;  %v796_v18 = vld [vmem:[%s1972_s6] sm:$0xff] (!%p1173_p6) }
  0x64   : > { %1351 = vmatprep.subr.bf16.mxu0 (!%p1173_p6), %v1350_v48 }
  0x66   : > { %1295 = vmatmul.mubr.bf16.vlgmr.msra.gmra.mrb[0].mxu0 %v1491_v19  ;;  %1299 = vmatmul.mubr.bf16.vlgmr.msra.gmra.mrb[0].mxu1 %v1492_v20  ;;  %v797_v19 = vld [vmem:[%s1972_s6 + $0x8] sm:$0xff] (!%p1173_p6) }
  0x67   : > { %1353 = vmatpush3.bf16.msra.mxu0 (!%p1173_p6), %v1350_v48  ;;  %v1366_v20 = vpack.c.bf16 (!%p1173_p6), %v797_v19, %v796_v18 }
  0x68   : > { %1355 = vmatprep.subr.bf16.mxu0 (!%p1173_p6), %v1354_v50 }
  0x69   : > { %1367 = vmatprep.subr.bf16.mxu1 (!%p1173_p6), %v1366_v20 }
  0x6a   : > { %1369 = vmatpush3.bf16.msra.mxu1 (!%p1173_p6), %v1366_v20 }
  0x6b   : > { %1357 = vmatpush3.bf16.msra.mxu0 (!%p1173_p6), %v1354_v50 }
  0x6c   : > { %1359 = vmatprep.subr.bf16.mxu0 (!%p1173_p6), %v1358_v62 }
  0x6f   : > { %1361 = vmatpush3.bf16.msra.mxu0 (!%p1173_p6), %v1358_v62 }
  0x70   : > { %1363 = vmatprep.subr.bf16.mxu0 (!%p1173_p6), %v1362_v5 }
  0x73   : > { %1365 = vmatpush3.bf16.msra.mxu0 (!%p1173_p6), %v1362_v5 }
 0x139   : > { %v1296_v25 = vpop.f32.mrb[0].mxu0  ;;  %v1300_v26 = vpop.f32.mrb[0].mxu1  ;;  %612 = sbr.rel (%p1173_p6) target bundleno = 797 (0x31d), region = 97 }
 0x13a   : > { %v594_v29 = vadd.f32 %v1296_v25, %v425_v21  ;;  %v598_v30 = vadd.f32 %v1300_v26, %v429_v22  ;;  %v561_v31 = vpop.f32.mrb[1].mxu0  ;;  %v577_v32 = vpop.f32.mrb[1].mxu1  ;;  %v798_v21 = vld [vmem:[%s1972_s6 + $0x10] sm:$0xff] (!%p1173_p6)  ;;  %v799_v22 = vld [vmem:[%s1972_s6 + $0x18] sm:$0xff] (!%p1173_p6)  ;;  %v930_v25 = vld [vmem:[%s1799_s27] sm:$0xff] (!%p1173_p6)  ;;  %v1640_v26 = vmov (!%p1173_p6), 0  }
 0x13b   : > { %v592_v35 = vadd.f32 %v561_v31, %v423_v23  ;;  %v596_v36 = vadd.f32 %v577_v32, %v427_v24  ;;  %v1297_v37 = vpop.f32.mrb[2].mxu0  ;;  %v1301_v38 = vpop.f32.mrb[2].mxu1  ;;  %v1370_v23 = vpack.c.bf16 (!%p1173_p6), %v799_v22, %v798_v21  ;;  %v932_v24 = vld [vmem:[%s1799_s27 + $0x10] sm:$0xff] (!%p1173_p6)  ;;  %1494 = vset.pattern.permute.xlu1 (!%p1173_p6), %v1640_v26  ;;  %1493 = vset.pattern.permute.xlu0 (!%p1173_p6), %v1640_v26  ;;  %v937_v31 = vld [vmem:[%s1799_s27 + $0x38] sm:$0xff] (!%p1173_p6) }
 0x13c   : > { %603 = vst.msk [vmem:[#allocation2 + $0x10] sm:$0xff] %vm600_vm1, %v594_v29  ;;  %607 = vst.msk [vmem:[#allocation2 + $0x30] sm:$0xff] %vm600_vm1, %v598_v30  ;;  %v595_v39 = vadd.f32 %v1297_v37, %v426_v27  ;;  %v599_v40 = vadd.f32 %v1301_v38, %v430_v28  ;;  %v564_v41 = vpop.f32.mrb[3].mxu0  ;;  %v580_v42 = vpop.f32.mrb[3].mxu1  ;;  %950 = vperm.xlu1 (!%p1173_p6), %1494, %v932_v24   ;;  %940 = vperm.xlu0 (!%p1173_p6), %1493, %v930_v25   ;;  %v933_v27 = vld [vmem:[%s1799_s27 + $0x18] sm:$0xff] (!%p1173_p6)  ;;  %v931_v28 = vld [vmem:[%s1799_s27 + $0x8] sm:$0xff] (!%p1173_p6) }
 0x13d   : > { %601 = vst.msk [vmem:[#allocation2] sm:$0xff] %vm600_vm1, %v592_v35  ;;  %605 = vst.msk [vmem:[#allocation2 + $0x20] sm:$0xff] %vm600_vm1, %v596_v36  ;;  %v593_v43 = vadd.f32 %v564_v41, %v424_v33  ;;  %v597_v44 = vadd.f32 %v580_v42, %v428_v34  ;;  %1371 = vmatprep.subr.bf16.mxu1 (!%p1173_p6), %v1370_v23  ;;  %v935_v29 = vld [vmem:[%s1799_s27 + $0x28] sm:$0xff] (!%p1173_p6)  ;;  %v934_v30 = vld [vmem:[%s1799_s27 + $0x20] sm:$0xff] (!%p1173_p6) }
 0x13e   : > { %604 = vst.msk [vmem:[#allocation2 + $0x18] sm:$0xff] %vm600_vm1, %v595_v39  ;;  %608 = vst.msk [vmem:[#allocation2 + $0x38] sm:$0xff] %vm600_vm1, %v599_v40  ;;  %1373 = vmatpush3.bf16.msra.mxu1 (!%p1173_p6), %v1370_v23  ;;  %v936_v32 = vld [vmem:[%s1799_s27 + $0x30] sm:$0xff] (!%p1173_p6)  ;;  %v1175_v33 = vld [vmem:[%s1971_s5] ss:$0 sm:$0xff] (!%p1173_p6) }
 0x13f   : > { %602 = vst.msk [vmem:[#allocation2 + $0x8] sm:$0xff] %vm600_vm1, %v593_v43  ;;  %606 = vst.msk [vmem:[#allocation2 + $0x28] sm:$0xff] %vm600_vm1, %v597_v44 }
 0x140   : > { %955 = vperm.xlu1 %1494, %v933_v27   ;;  %945 = vperm.xlu0 %1493, %v931_v28  }
 0x143   : > { %v615_v56 = vld [vmem:[#allocation2 + $0x10] sm:$0xff] }
 0x144   : > { %v613_v53 = vld [vmem:[#allocation2] sm:$0xff]  ;;  %v630_v59 = vadd.f32 %v1174_v54, %v615_v56  ;;  %v619_v4 = vld [vmem:[#allocation2 + $0x30] sm:$0xff]  ;;  %965 = vperm.xlu1 %1494, %v935_v29   ;;  %960 = vperm.xlu0 %1493, %v934_v30  }
 0x145   : > { %v628_v57 = vadd.f32 %v1174_v54, %v613_v53  ;;  %v616_v60 = vld [vmem:[#allocation2 + $0x18] sm:$0xff]  ;;  %v617_v61 = vld [vmem:[#allocation2 + $0x20] sm:$0xff]  ;;  %v634_v7 = vadd.f32 %v1174_v54, %v619_v4 }
 0x146   : > { %v614_v55 = vld [vmem:[#allocation2 + $0x8] sm:$0xff]  ;;  %v631_v1 = vadd.f32 %v1174_v54, %v616_v60  ;;  %v632_v2 = vadd.f32 %v1174_v54, %v617_v61  ;;  %v620_v8 = vld [vmem:[#allocation2 + $0x38] sm:$0xff] }
 0x147   : > { %v629_v58 = vadd.f32 %v1174_v54, %v614_v55  ;;  %1495 = vtanh.f32 %v628_v57  ;;  %v618_v3 = vld [vmem:[#allocation2 + $0x28] sm:$0xff]  ;;  %v635_v9 = vadd.f32 %v1174_v54, %v620_v8 }
 0x148   : > { %v633_v6 = vadd.f32 %v1174_v54, %v618_v3  ;;  %975 = vperm.xlu1 %1494, %v937_v31   ;;  %970 = vperm.xlu0 %1493, %v936_v32  }
 0x149   : > { %1497 = vtanh.f32 %v629_v58 }
 0x14a   : > { %1499 = vtanh.f32 %v630_v59 }
 0x14b   : > { %1501 = vtanh.f32 %v631_v1 }
 0x14c   : > { %1503 = vtanh.f32 %v632_v2 }
 0x14d   : > { %1505 = vtanh.f32 %v633_v6 }
 0x14e   : > { %1507 = vtanh.f32 %v634_v7 }
 0x14f   : > { %1509 = vtanh.f32 %v635_v9 }
 0x151   : > { %v1496_v10 = vpop.eup %1495 }
 0x152   : > { %1318 = vmatprep.mubr.msk.f32.mxu0 %vm600_vm1, %v1496_v10 }
 0x153   : > { %v1498_v11 = vpop.eup %1497 }
 0x154   : > { %v1500_v12 = vpop.eup %1499  ;;  %1319 = vmatmul.mubr.msk.f32.vlgmr.msra.gmra.mrb[0].mxu0 %vm600_vm1, %v1498_v11 }
 0x155   : > { %v1502_v13 = vpop.eup %1501  ;;  %1321 = vmatprep.mubr.msk.f32.mxu0 %vm600_vm1, %v1500_v12 }
 0x156   : > { %v1504_v14 = vpop.eup %1503 }
 0x157   : > { %v1506_v15 = vpop.eup %1505 }
 0x158   : > { %1322 = vmatmul.mubr.msk.f32.gmra.mrb[2].mxu0 %vm600_vm1, %v1502_v13  ;;  %v1508_v16 = vpop.eup %1507 }
 0x159   : > { %1324 = vmatprep.mubr.msk.f32.mxu0 %vm600_vm1, %v1504_v14  ;;  %v1510_v17 = vpop.eup %1509 }
 0x15c   : > { %1325 = vmatmul.mubr.msk.f32.gmra.mrb[4].mxu0 %vm600_vm1, %v1506_v15 }
 0x15d   : > { %1327 = vmatprep.mubr.msk.f32.mxu0 %vm600_vm1, %v1508_v16 }
 0x160   : > { %1328 = vmatmul.mubr.msk.f32.gmra.mrb[6].mxu0 %vm600_vm1, %v1510_v17 }
 0x1bb   : > { %v951_v58 = vpop.permute.xlu1 %950  ;;  %v941_v59 = vpop.permute.xlu0 %940 }
 0x1bf   : > { %v956_v60 = vpop.permute.xlu1 %955  ;;  %v946_v61 = vpop.permute.xlu0 %945 }
 0x1c3   : > { %v966_v6 = vpop.permute.xlu1 %965  ;;  %v961_v8 = vpop.permute.xlu0 %960 }
 0x1c7   : > { %v976_v14 = vpop.permute.xlu1 %975  ;;  %v971_v17 = vpop.permute.xlu0 %970 }
 0x227   : > { %v1320_v34 = vpop.f32.mrb[0].mxu0 }
 0x228   : > { %v755_v35 = vadd.f32 %v1320_v34, %v1175_v33  ;;  %v749_v36 = vpop.f32.mrb[1].mxu0 }
 0x229   : > { %v750_v37 = vadd.f32 %v1175_v33, %v749_v36 }
 0x22b   : > { %1511 = vtanh.f32 %v750_v37  ;;  %v1323_v38 = vpop.f32.mrb[2].mxu0 }
 0x22c   : > { %1513 = vtanh.f32 %v755_v35  ;;  %v765_v39 = vadd.f32 %v1323_v38, %v1175_v33  ;;  %v759_v40 = vpop.f32.mrb[3].mxu0 }
 0x22d   : > { %v760_v41 = vadd.f32 %v1175_v33, %v759_v40 }
 0x22f   : > { %1515 = vtanh.f32 %v760_v41  ;;  %v1326_v42 = vpop.f32.mrb[4].mxu0 }
 0x230   : > { %1517 = vtanh.f32 %v765_v39  ;;  %v775_v43 = vadd.f32 %v1326_v42, %v1175_v33  ;;  %v769_v44 = vpop.f32.mrb[5].mxu0 }
 0x231   : > { %v770_v45 = vadd.f32 %v1175_v33, %v769_v44 }
 0x233   : > { %1519 = vtanh.f32 %v770_v45  ;;  %v1329_v46 = vpop.f32.mrb[6].mxu0 }
 0x234   : > { %1521 = vtanh.f32 %v775_v43  ;;  %v785_v47 = vadd.f32 %v1329_v46, %v1175_v33  ;;  %v779_v48 = vpop.f32.mrb[7].mxu0 }
 0x235   : > { %v1512_v49 = vpop.eup %1511  ;;  %v780_v50 = vadd.f32 %v1175_v33, %v779_v48 }
 0x236   : > { %v1514_v51 = vpop.eup %1513  ;;  %1338 = vmatprep.mubr.msk.f32.mxu1 %vm800_vm2, %v1512_v49 }
 0x237   : > { %1523 = vtanh.f32 %v780_v50  ;;  %1339 = vmatmul.mubr.msk.f32.vlgmr.msra.gmra.mrb[0].mxu1 %vm800_vm2, %v1514_v51 }
 0x238   : > { %1525 = vtanh.f32 %v785_v47 }
 0x239   : > { %v1516_v52 = vpop.eup %1515 }
 0x23a   : > { %v1518_v53 = vpop.eup %1517  ;;  %1341 = vmatprep.mubr.msk.f32.mxu1 %vm800_vm2, %v1516_v52 }
 0x23b   : > { %1342 = vmatmul.mubr.msk.f32.gmra.mrb[2].mxu1 %vm800_vm2, %v1518_v53 }
 0x23d   : > { %v1520_v54 = vpop.eup %1519 }
 0x23e   : > { %v1522_v55 = vpop.eup %1521  ;;  %1344 = vmatprep.mubr.msk.f32.mxu1 %vm800_vm2, %v1520_v54 }
 0x23f   : > { %1345 = vmatmul.mubr.msk.f32.gmra.mrb[4].mxu1 %vm800_vm2, %v1522_v55 }
 0x241   : > { %v1524_v56 = vpop.eup %1523 }
 0x242   : > { %v1526_v57 = vpop.eup %1525  ;;  %1347 = vmatprep.mubr.msk.f32.mxu1 %vm800_vm2, %v1524_v56 }
 0x243   : > { %1348 = vmatmul.mubr.msk.f32.gmra.mrb[6].mxu1 %vm800_vm2, %v1526_v57 }
 0x30a   : > { %v1340_v62 = vpop.f32.mrb[0].mxu1 }
 0x30b   : > { %v979_v63 = vmul.f32 %v1340_v62, %v946_v61  ;;  %v891_v0 = vpop.f32.mrb[1].mxu1 }
 0x30c   : > { %v978_v1 = vmul.f32 %v941_v59, %v891_v0 }
 0x30e   : > { %v1218_v2 = vpack.c.bf16 %v979_v63, %v978_v1  ;;  %v1343_v3 = vpop.f32.mrb[2].mxu1 }
 0x30f   : > { %v981_v4 = vmul.f32 %v1343_v3, %v956_v60  ;;  %v901_v5 = vpop.f32.mrb[3].mxu1 }
 0x310   : > { %1219 = vst [vmem:[%s1803_s14] sm:$0xff] %v1218_v2   ;;  %v980_v7 = vmul.f32 %v951_v58, %v901_v5 }
 0x312   : > { %v1223_v9 = vpack.c.bf16 %v981_v4, %v980_v7  ;;  %v1346_v10 = vpop.f32.mrb[4].mxu1 }
 0x313   : > { %v983_v11 = vmul.f32 %v1346_v10, %v966_v6  ;;  %v911_v12 = vpop.f32.mrb[5].mxu1 }
 0x314   : > { %1235 = vst [vmem:[%s1803_s14 + $0x8] sm:$0xff] %v1223_v9   ;;  %v982_v13 = vmul.f32 %v961_v8, %v911_v12 }
 0x316   : > { %v1228_v15 = vpack.c.bf16 %v983_v11, %v982_v13  ;;  %v1349_v16 = vpop.f32.mrb[6].mxu1 }
 0x317   : > { %v985_v18 = vmul.f32 %v1349_v16, %v976_v14  ;;  %v921_v19 = vpop.f32.mrb[7].mxu1 }
 0x318   : > { %1236 = vst [vmem:[%s1803_s14 + $0x10] sm:$0xff] %v1228_v15   ;;  %v984_v20 = vmul.f32 %v971_v17, %v921_v19 }
 0x31a   : > { %v1233_v21 = vpack.c.bf16 %v985_v18, %v984_v20 }
 0x31c   : > { %1237 = vst [vmem:[%s1803_s14 + $0x18] sm:$0xff] %v1233_v21  }
 0x31d PF: > { %s1214_s27 = sshll.u32 %s1625_s30, 9  ;;  %s1040_s12 = sshll.u32 %s1803_s14, 4  ;;  %s1904_s12 = int_to_ptr.vmem [resolvable:$true] %s1040_s12 }
 0x31e   : > { %s1901_s22 = scalar_lea.hbm %s1973_s7, %s1214_s27  ;;  %s1990_s16 = sand.u32 1, %s1605_s25  }
 0x31f   : > { %s1908_s20 = scalar_lea.sflag [#allocation5], %s1990_s16  ;;  %s1527_s29 = scalar_lea.vmem %s1904_s12, 512 }
 0x320   : > { %p1528_p8 = scmp.ne.s32.totalorder %s1904_s12, %s1527_s29  ;;  %s1641_s30 = smov [#allocation4]  }
 0x321   : > { %s1531_s21 = sshll.u32 %s1641_s30, 4  ;;  %s1532_s21 = int_to_ptr.vmem [resolvable:$false] %s1531_s21 }
 0x322   : > { %p1529_p9 = pnand %p1528_p8, %p1756_p7  ;;  %s1533_s18 = scalar_lea.vmem %s1532_s21, 1024 }
 0x323   : > { %p1534_p11 = scmp.lt.s32.totalorder %s1904_s12, %s1532_s21  ;;  %p1535_p13 = scmp.lt.s32.totalorder %s1533_s18, %s1527_s29 }
 0x324   : > { %p1530_p10 = pneg %p1529_p9 }
 0x325   : > { %p1536_p0 = por %p1535_p13, %p1534_p11 }
 0x327   : > { %p1537_p1 = pnand %p1536_p0, %p1530_p10 }
 0x329   : > { %1540 = shalt.err (!%p1537_p1)
}
 0x32a   : > { %s1541_s14 = scalar_lea.hbm %s1901_s22, 512  ;;  %s1545_s0 = scalar_lea.hbm %s1973_s7, 2048 }
 0x32b   : > { %p1542_p2 = scmp.ne.s32.totalorder %s1901_s22, %s1541_s14  ;;  %p1546_p5 = scmp.lt.u32.totalorder %s1901_s22, %s1973_s7 }
 0x32c   : > { %p1547_p6 = scmp.lt.u32.totalorder %s1545_s0, %s1541_s14  ;;  %p1549_p9 = scmp.lt.u32.totalorder %s1541_s14, %s1901_s22 }
 0x32d   : > { %p1543_p3 = pnand %p1542_p2, %p1756_p7 }
 0x32e   : > { %p1548_p8 = por %p1547_p6, %p1546_p5 }
 0x32f   : > { %p1544_p4 = pneg %p1543_p3 }
 0x330   : > { %p1550_p10 = por %p1549_p9, %p1548_p8 }
 0x332   : > { %p1551_p11 = pnand %p1550_p10, %p1544_p4 }
 0x334   : > { %1554 = shalt.err (!%p1551_p11)
}
 0x335   : > { %s1642_s9 = smov 64   ;;  %s1643_s17 = smov 4  }
 0x336   : > { %1390 = dma.vmem_to_hbm [thread:$0]  (%p1756_p7), %s1904_s12, 512, %s1901_s22, %s1908_s20, %s1642_s9, %s1642_s9, %s1643_s17  }
 0x337 PF: > { %p1396_p13 = scmp.ge.s32.totalorder %s1637_s10, 2  ;;  %s1055_s29 = sand.u32 1, %s1601_s24  }
 0x338   : > { %s1056_s30 = scalar_lea.sflag [#allocation5], %s1055_s29 }
 0x339   : > { %p1393_p0 = pnand %p1396_p13, %p1764_p12 }
 0x33b   : > { %1596 = dma.done.wait (!%p1393_p0), %s1056_s30, 512  }
 0x33c   : > { %1598 = vsyncadd (!%p1393_p0), %s1056_s30, 4294966784  ;;  %s20_s10 = sadd.s32 1, %s1637_s10   ;;  %s1992_s29 = sld [smem:[#allocation7_spill]] }
 0x33d   : > { %p17_p1 = scmp.ge.s32.totalorder %s20_s10, 10   ;;  %s1993_s30 = sld [smem:[#allocation8_spill]] }
 0x33e   : > { %s1994_s8 = sld [smem:[#allocation9_spill]]  ;;  %s1995_s9 = sld [smem:[#allocation10_spill]] }
 0x33f   : > { %s1996_s24 = smov %s1605_s25  ;;  %s1997_s25 = smov %s1609_s26 }
 0x340   : > { %s1998_s26 = smov %s1769_s23  ;;  %s1999_s27 = smov %s1617_s28 }
 0x341   : > { %s2000_s28 = smov %s1772_s11  ;;  %19 = sbr.rel (!%p17_p1) target bundleno = 8 (0x8), region = 143 }
 0x348   :  { %1061 = vsyncpa [#allocation5], 1 }
 0x349   :  { %1063 = vsyncpa [#allocation5 + $0x1], 1 }

</bundles_post_ra>
